<compile_context>
chip_gen: v7x
topology: tpu7x:2x2x1
jax: 0.10.0
libtpu: 0.0.40
codegen_flags: <defaults>
</compile_context>

<pallas_src>
import functools

import jax
import jax.numpy as jnp
import numpy as np
from jax.experimental import pallas as pl
from jax.experimental.pallas import tpu as pltpu


def _attention_mask_kernel(x_ref, o_ref, *, scale: float):
    # x_ref / o_ref views are (TM, L_pad) row-tiles; lanes carry the spatial dim.
    x = x_ref[...]
    # Row sum over the (zero-padded) spatial axis, accumulated in f32.
    xsum = jnp.sum(x, axis=-1, keepdims=True, dtype=jnp.float32)
    # EUP reciprocal (separate issue slot) + one Newton-Raphson refinement so the
    # result matches an exact divide to ~f32 precision. This is per-row (TM x 1)
    # work, negligible next to the per-element broadcast multiply below.
    r = pl.reciprocal(xsum, approx=True)
    r = r * (jnp.float32(2.0) - xsum * r)
    inv = (r * jnp.float32(scale)).astype(x.dtype)
    o_ref[...] = x * inv


def attention_mask(x: jax.Array) -> jax.Array:
    """Pallas implementation of Attention_mask.forward for NCHW input."""
    N, C, H, W = x.shape
    scale = float(H) * float(W) * 0.5

    R = N * C                       # rows  = (n, c) slabs
    L = H * W                       # lanes = flattened spatial
    itemsize = jnp.dtype(x.dtype).itemsize

    # Lane-pad the spatial dim to a multiple of 128 (zeros keep the sum exact).
    L_pad = ((L + 127) // 128) * 128

    # Row tile: multiple of 8, ~2 MiB of input per tile.
    target_tile_bytes = 2 * 1024 * 1024
    tm = max(8, (target_tile_bytes // (L_pad * itemsize)) // 8 * 8)
    tm = min(tm, ((R + 7) // 8) * 8)
    R_pad = ((R + tm - 1) // tm) * tm

    x2 = x.reshape(R, L)
    if L_pad != L:
        x2 = jnp.pad(x2, ((0, 0), (0, L_pad - L)))           # zeros: sum unchanged
    if R_pad != R:
        # Pad rows with ones so padded rows stay finite (they are sliced off).
        x2 = jnp.pad(x2, ((0, R_pad - R), (0, 0)), constant_values=1)

    kernel = functools.partial(_attention_mask_kernel, scale=scale)
    out2 = pl.pallas_call(
        kernel,
        out_shape=jax.ShapeDtypeStruct((R_pad, L_pad), x.dtype),
        grid_spec=pltpu.PrefetchScalarGridSpec(
            num_scalar_prefetch=0,
            grid=(R_pad // tm,),
            in_specs=[pl.BlockSpec((tm, L_pad), lambda i: (i, 0))],
            out_specs=pl.BlockSpec((tm, L_pad), lambda i: (i, 0)),
        ),
        compiler_params=pltpu.CompilerParams(
            dimension_semantics=("parallel",),
        ),
    )(x2)

    return out2[:R, :L].reshape(N, C, H, W)


def attention_mask_ref(x: jax.Array) -> jax.Array:
    """Pure-JAX reference mirroring the PyTorch forward."""
    _, _, H, W = x.shape
    xsum = jnp.sum(x, axis=2, keepdims=True)
    xsum = jnp.sum(xsum, axis=3, keepdims=True)
    return x / xsum * H * W * 0.5


if __name__ == "__main__":
    key = jax.random.PRNGKey(0)
    k1, k2 = jax.random.split(key)

    # Main case: positive inputs (post-sigmoid attention maps), 16x16 spatial.
    x = jax.random.uniform(k1, (2, 4, 16, 16), dtype=jnp.float32,
                           minval=0.1, maxval=1.0)
    out = jax.block_until_ready(attention_mask(x))
    np.testing.assert_allclose(np.asarray(out), np.asarray(attention_mask_ref(x)),
                               rtol=1e-4, atol=1e-4)

    # MTTS-CAN-like case: 1-channel 9x9 mask (exercises lane/row padding path).
    x9 = jax.random.uniform(k2, (4, 1, 9, 9), dtype=jnp.float32,
                            minval=0.1, maxval=1.0)
    out9 = jax.block_until_ready(attention_mask(x9))
    np.testing.assert_allclose(np.asarray(out9), np.asarray(attention_mask_ref(x9)),
                               rtol=1e-4, atol=1e-4)

    print("KERNEL_OK")
</pallas_src>

<mosaic_0001>
module attributes {stable_mosaic.version = 11 : i64} {
  func.func @_attention_mask_kernel(%arg0: i32, %arg1: memref<8x256xf32, #tpu.memory_space<vmem>>, %arg2: memref<8x256xf32, #tpu.memory_space<vmem>>) attributes {dimension_semantics = [#tpu.dimension_semantics<parallel>], iteration_bounds = array<i64: 1>, scalar_prefetch = 0 : i64, scratch_operands = 0 : i64, tpu.core_type = #tpu.core_type<tc>, window_params = [{transform_indices = @transform_0, window_bounds = array<i64: 8, 256>}, {transform_indices = @transform_1, window_bounds = array<i64: 8, 256>}]} {
    %c0 = arith.constant 0 : index
    %c0_0 = arith.constant 0 : index
    %0 = vector.load %arg1[%c0, %c0_0] : memref<8x256xf32, #tpu.memory_space<vmem>>, vector<8x256xf32>
    %cst = arith.constant dense<0.000000e+00> : vector<8xf32>
    %1 = vector.multi_reduction <add>, %0, %cst [1] : vector<8x256xf32> to vector<8xf32>
    %2 = vector.shape_cast %1 : vector<8xf32> to vector<8x1xf32>
    %3 = tpu.reciprocal %2 {approx = true} : vector<8x1xf32> -> vector<8x1xf32>
    %4 = arith.mulf %2, %3 : vector<8x1xf32>
    %cst_1 = arith.constant 2.000000e+00 : f32
    %5 = vector.broadcast %cst_1 : f32 to vector<8x1xf32>
    %6 = arith.subf %5, %4 : vector<8x1xf32>
    %7 = arith.mulf %3, %6 : vector<8x1xf32>
    %cst_2 = arith.constant 1.280000e+02 : f32
    %8 = vector.broadcast %cst_2 : f32 to vector<8x1xf32>
    %9 = arith.mulf %7, %8 : vector<8x1xf32>
    %10 = vector.broadcast %9 : vector<8x1xf32> to vector<8x256xf32>
    %11 = arith.mulf %0, %10 : vector<8x256xf32>
    %c0_3 = arith.constant 0 : index
    %c0_4 = arith.constant 0 : index
    %12 = vector.load %arg2[%c0_3, %c0_4] : memref<8x256xf32, #tpu.memory_space<vmem>>, vector<8x256xf32>
    tpu.vector_store %arg2[%c0_3, %c0_4], %11 {strides = array<i32>} : memref<8x256xf32, #tpu.memory_space<vmem>>, vector<8x256xf32>,
    return
  }
  func.func @transform_0(%arg0: i32) -> (i32, i32) {
    %c0_i32 = arith.constant 0 : i32
    %c0_i32_0 = arith.constant 0 : i32
    return %arg0, %c0_i32 : i32, i32
  }
  func.func @transform_1(%arg0: i32) -> (i32, i32) {
    %c0_i32 = arith.constant 0 : i32
    %c0_i32_0 = arith.constant 0 : i32
    return %arg0, %c0_i32 : i32, i32
  }
}

</mosaic_0001>

<bundles_post_ra>
// kernel: tpu_custom_call.1
= control target key start
LH: loop header
LB: loop body
LE: loop exit
PB: predicated region body
PF: predicated region fallthrough
CT: control target
= control target key end

     0   :  { %6 = vsyncpa [#allocation3], 0  ;;  %s138_s0 = inlined_call_operand.hbm [shape: f32[8,256], index: 0, kind: input, shape index: {}]   ;;  %s139_s1 = inlined_call_operand.hbm [shape: f32[8,256], index: 1, kind: output, shape index: {}]  }
   0x1   :  { %7 = vsyncpa [#allocation4], 0  ;;  %s102_s6 = smov [#allocation2]   ;;  %s54_s10 = scalar_lea.hbm %s138_s0, 256 }
   0x2   :  { %s14_s7 = sshll.u32 %s102_s6, 4  ;;  %p55_p0 = scmp.ne.s32.totalorder %s138_s0, %s54_s10  ;;  %s15_s7 = int_to_ptr.vmem [resolvable:$true] %s14_s7 }
   0x3   :  { %p58_p1 = scmp.lt.u32.totalorder %s54_s10, %s138_s0 }
   0x5   :  { %p60_p2 = pnand %p58_p1, %p55_p0 }
   0x7   :  { %63 = shalt.err (!%p60_p2)
}
   0x8   :  { %s64_s15 = scalar_lea.vmem %s15_s7, 256  ;;  %p69_p4 = scmp.lt.s32.totalorder %s15_s7, %s15_s7 }
   0x9   :  { %p65_p3 = scmp.ne.s32.totalorder %s15_s7, %s64_s15  ;;  %p70_p5 = scmp.lt.s32.totalorder %s64_s15, %s64_s15 }
   0xb   :  { %p71_p6 = por %p70_p5, %p69_p4 }
   0xd   :  { %p72_p7 = pnand %p71_p6, %p65_p3 }
   0xf   :  { %75 = shalt.err (!%p72_p7)
}
  0x10   :  { %17 = dma.hbm_to_vmem [thread:$0]  %s138_s0, 256, %s15_s7, [#allocation3]  }
  0x11   :  { %98 = dma.done.wait [#allocation3], 256  }
  0x12   :  { %99 = vsyncadd [#allocation3], 4294967040  ;;  %v21_v0 = vld [vmem:[#allocation2] sm:$0xff]  ;;  %v22_v1 = vld [vmem:[#allocation2 + $0x8] sm:$0xff]  ;;  %s103_s18 = smov [#allocation5]  }
  0x13   :  { %v23_v2 = vadd.f32 %v22_v1, %v21_v0  ;;  %s41_s19 = sshll.u32 %s103_s18, 4  ;;  %s42_s19 = int_to_ptr.vmem [resolvable:$true] %s41_s19 }
  0x14   :  { %s76_s0 = scalar_lea.vmem %s42_s19, 256  ;;  %p81_p9 = scmp.lt.s32.totalorder %s42_s19, %s42_s19 }
  0x15   :  { %24 = vadd.xlane.f32.xlu0 %v23_v2  ;;  %p77_p8 = scmp.ne.s32.totalorder %s42_s19, %s76_s0  ;;  %p82_p10 = scmp.lt.s32.totalorder %s76_s0, %s76_s0 }
  0x17   :  { %p83_p11 = por %p82_p10, %p81_p9 }
  0x19   :  { %p84_p12 = pnand %p83_p11, %p77_p8 }
  0xa2   :  { %v25_v3 = vpop.xlane.xlu0 %24 }
  0xa3   :  { %52 = vrcp.f32 %v25_v3 }
  0xad   :  { %v53_v4 = vpop.eup %52 }
  0xae   :  { %v27_v5 = vmul.f32 %v53_v4, %v25_v3 }
  0xb0   :  { %v28_v6 = vsub.f32 2.0, %v27_v5 }
  0xb2   :  { %v29_v7 = vmul.f32 %v53_v4, %v28_v6 }
  0xb4   :  { %v30_v8 = vmul.f32 128.0, %v29_v7 }
  0xb6   :  { %v31_v9 = vmul.f32 %v30_v8, %v21_v0  ;;  %v32_v10 = vmul.f32 %v30_v8, %v22_v1 }
  0xb8   :  { %33 = vst [vmem:[#allocation5] sm:$0xff] %v31_v9  ;;  %34 = vst [vmem:[#allocation5 + $0x8] sm:$0xff] %v32_v10 }
  0xb9   :  { %87 = shalt.err (!%p84_p12)
}
  0xba   :  { %s88_s22 = scalar_lea.hbm %s139_s1, 256 }
  0xbb   :  { %p89_p13 = scmp.ne.s32.totalorder %s139_s1, %s88_s22  ;;  %p92_p0 = scmp.lt.u32.totalorder %s88_s22, %s139_s1 }
  0xbd   :  { %p94_p1 = pnand %p92_p0, %p89_p13 }
  0xbf   :  { %97 = shalt.err (!%p94_p1)
}
  0xc0   :  { %44 = dma.vmem_to_hbm [thread:$0]  %s42_s19, 256, %s139_s1, [#allocation4]  }
  0xc1   :  { %100 = dma.done.wait [#allocation4], 256  }
  0xc2   :  { %101 = vsyncadd [#allocation4], 4294967040 }
  0xc3   :  { %48 = vsyncpa [#allocation3], 1 }
  0xc4   :  { %49 = vsyncpa [#allocation4], 1 }

</bundles_post_ra>
